<compile_context>
chip_gen: v6e
topology: v6e:2x2x1
jax: 0.10.0
libtpu: 0.0.40
codegen_flags: <defaults>
</compile_context>

<pallas_src>
import functools

import numpy as np
import jax
import jax.numpy as jnp
from jax.experimental import pallas as pl
from jax.experimental.pallas import tpu as pltpu

_LANE = 128


# ----------------------- host-side schedule construction -----------------------
def clip_noise_schedule(alphas2, clip_value=0.001):
    alphas2 = np.concatenate([np.ones(1), alphas2], axis=0)
    alphas_step = alphas2[1:] / alphas2[:-1]
    alphas_step = np.clip(alphas_step, a_min=clip_value, a_max=1.0)
    alphas2 = np.cumprod(alphas_step, axis=0)
    return alphas2


def polynomial_schedule(timesteps: int, s=0.0001, power=1.0):
    steps = timesteps + 1
    x = np.linspace(0, steps, steps)
    alphas2 = (1 - np.power(x / steps, power)) ** 2
    alphas2 = clip_noise_schedule(alphas2, clip_value=0.001)
    precision = 1 - 2 * s
    alphas2 = precision * alphas2 + s
    return alphas2


def build_gamma_table(noise_schedule: str, timesteps: int, precision: float) -> np.ndarray:
    splits = noise_schedule.split('_')
    assert len(splits) == 2
    power = float(splits[1])
    alphas2 = polynomial_schedule(timesteps, s=precision, power=power)
    sigmas2 = 1 - alphas2
    log_alphas2 = np.log(alphas2)
    log_sigmas2 = np.log(sigmas2)
    log_alphas2_to_sigmas2 = log_alphas2 - log_sigmas2
    gamma = -log_alphas2_to_sigmas2
    return gamma.astype(np.float32)  # shape (timesteps + 1,)


def prepare_gamma_row(gamma_np: np.ndarray) -> jax.Array:
    """Pad the gamma table once on the host into a lane-dense (1, L_pad) f32 row.

    L_pad is a multiple of 128 (clean lane layout, clean MXU contraction dim).
    Padded entries are zero and unreachable after the index clamp in the kernel.
    """
    L = gamma_np.shape[0]
    L_pad = int(pl.cdiv(L, _LANE)) * _LANE
    row = np.zeros((1, L_pad), np.float32)
    row[0, :L] = gamma_np.astype(np.float32)
    return jnp.asarray(row)


# ------------------------------- Pallas kernel ---------------------------------
def _noise_schedule_kernel(t_ref, gamma_ref, out_ref, *, timesteps: int):
    # t_ref:     (1, TB)     float32 in VMEM (lane-dense block of t values)
    # gamma_ref: (1, L_pad)  float32 in VMEM (lane-dense gamma row, DMA'd once)
    # out_ref:   (1, TB)     float32 in VMEM (lane-dense output block)
    t = t_ref[...]                                                   # (1, TB)
    L_pad = gamma_ref.shape[1]
    TB = t.shape[1]

    # t_int = round(t * timesteps); jnp.round matches torch.round (half-to-even).
    t_int = jnp.round(t * jnp.float32(timesteps)).astype(jnp.int32)  # (1, TB)
    # Clamp so out-of-range t yields the boundary gamma rather than garbage/0.0
    # (intentional, safe deviation from raw PyTorch indexing semantics).
    t_int = jnp.clip(t_int, 0, timesteps)                            # (1, TB)

    # One-hot along the sublane axis; padded rows (idx >= timesteps+1) never match.
    sub_idx = jax.lax.broadcasted_iota(jnp.int32, (L_pad, TB), 0)    # (L_pad, TB)
    onehot = (sub_idx == t_int).astype(jnp.float32)                  # (L_pad, TB)

    # Gather via MXU contraction: (1, L_pad) @ (L_pad, TB) -> (1, TB).  Exact —
    # each output column has a single nonzero (1.0 * gamma) term.
    out_ref[...] = jnp.dot(gamma_ref[...], onehot,
                           preferred_element_type=jnp.float32)


def _choose_tiling(B: int, L_pad: int):
    """Pick (TB, B_pad) for the lane axis.

    TB is bounded so a few (L_pad, TB) f32/int32 temporaries stay well inside the
    smallest scoped-VMEM budget across generations (v5e 16 MiB).  For large B the
    lane axis is split into >= 2 grid steps so the "parallel" axis can shard across
    v7x's two TensorCores; tiny batches keep a single block (less fixed overhead).
    """
    slab_budget_bytes = 2 * 1024 * 1024          # per (L_pad, TB) f32 temporary
    tb_vmem_cap = max(_LANE, (slab_budget_bytes // (4 * L_pad)) // _LANE * _LANE)
    tb_cap = min(8192, tb_vmem_cap)

    b_lanes = max(int(pl.cdiv(max(B, 1), _LANE)) * _LANE, _LANE)
    if b_lanes <= tb_cap:
        if B >= 2048:
            tb = max(_LANE, int(pl.cdiv(b_lanes // 2, _LANE)) * _LANE)  # >=2 steps (v7x)
        else:
            tb = b_lanes                                                # single block
    else:
        tb = tb_cap
    b_pad = int(pl.cdiv(b_lanes, tb)) * tb
    return tb, b_pad


def predefined_noise_schedule_forward_pallas(t: jax.Array, gamma_row: jax.Array,
                                             timesteps: int) -> jax.Array:
    """Pallas path. t: any shape, float in [0, 1]; gamma_row: (1, L_pad) prepadded f32.
    Returns gamma[round(t * timesteps)] with the same shape as t (float32)."""
    orig_shape = t.shape
    t_flat = jnp.reshape(t, (-1,)).astype(jnp.float32)
    B = t_flat.shape[0]
    L_pad = gamma_row.shape[1]

    TB, B_pad = _choose_tiling(B, L_pad)
    t_row = jnp.zeros((1, B_pad), jnp.float32).at[0, :B].set(t_flat)

    grid = (B_pad // TB,)
    kernel = functools.partial(_noise_schedule_kernel, timesteps=timesteps)

    out = pl.pallas_call(
        kernel,
        out_shape=jax.ShapeDtypeStruct((1, B_pad), jnp.float32),
        grid=grid,
        in_specs=[
            pl.BlockSpec((1, TB), lambda i: (0, i)),       # t block, lane-dense
            pl.BlockSpec((1, L_pad), lambda i: (0, 0)),    # gamma row: grid-invariant
        ],
        out_specs=pl.BlockSpec((1, TB), lambda i: (0, i)),  # lane-dense output block
        compiler_params=pltpu.CompilerParams(
            dimension_semantics=("parallel",)),
    )(t_row, gamma_row)

    return out[0, :B].reshape(orig_shape)


def predefined_noise_schedule_forward(t: jax.Array, gamma_row: jax.Array,
                                      timesteps: int, *,
                                      small_batch_threshold: int = 1024) -> jax.Array:
    """Dispatching wrapper: tiny batches are pure pallas_call overhead (grid setup +
    3 DMAs for a few bytes of output), so let XLA fuse a plain take there; larger
    batches use the Pallas kernel."""
    B = 1
    for d in t.shape:
        B *= int(d)
    if B < small_batch_threshold:
        t_int = jnp.clip(
            jnp.round(t.astype(jnp.float32) * jnp.float32(timesteps)).astype(jnp.int32),
            0, timesteps)
        return jnp.take(gamma_row[0], t_int, axis=0)
    return predefined_noise_schedule_forward_pallas(t, gamma_row, timesteps)


# ----------------------------------- main ---------------------------------------
if __name__ == "__main__":
    noise_schedule = "polynomial_2"
    timesteps = 16
    precision = 1e-4
    batch = 8

    # Deterministic "parameter" (non-learned gamma lookup table), built and padded
    # on the host exactly once, like the PyTorch __init__.
    gamma_np = build_gamma_table(noise_schedule, timesteps, precision)   # (17,)
    gamma_row = prepare_gamma_row(gamma_np)                              # (1, 128)

    key = jax.random.PRNGKey(0)
    k1, k2 = jax.random.split(key)
    # Small input shaped like the PyTorch usage: (B, 1) in [0, 1].
    t_small = jax.random.uniform(k1, (batch, 1), dtype=jnp.float32)
    # Slightly larger flat batch to exercise a multi-step ("parallel") grid.
    t_big = jax.random.uniform(k2, (2304,), dtype=jnp.float32)

    # Force the Pallas kernel path on both inputs to validate the kernel itself.
    out_small = jax.block_until_ready(
        predefined_noise_schedule_forward_pallas(t_small, gamma_row, timesteps))
    out_big = jax.block_until_ready(
        predefined_noise_schedule_forward_pallas(t_big, gamma_row, timesteps))
    # Dispatching wrapper (takes the fused plain-JAX path at this tiny size).
    out_dispatch = jax.block_until_ready(
        predefined_noise_schedule_forward(t_small, gamma_row, timesteps))

    def ref(t_arr):
        t_np = np.asarray(t_arr)
        t_int = np.clip(np.rint(t_np * timesteps).astype(np.int64), 0, timesteps)
        return gamma_np[t_int]

    np.testing.assert_allclose(np.asarray(out_small), ref(t_small), rtol=1e-6, atol=1e-6)
    np.testing.assert_allclose(np.asarray(out_big), ref(t_big), rtol=1e-6, atol=1e-6)
    np.testing.assert_allclose(np.asarray(out_dispatch), ref(t_small), rtol=1e-6, atol=1e-6)

    print("KERNEL_OK")
</pallas_src>

<mosaic_0001>
module attributes {stable_mosaic.version = 11 : i64} {
  func.func @_noise_schedule_kernel(%arg0: i32, %arg1: memref<1x128xf32, #tpu.memory_space<vmem>>, %arg2: memref<1x128xf32, #tpu.memory_space<vmem>>, %arg3: memref<1x128xf32, #tpu.memory_space<vmem>>) attributes {dimension_semantics = [#tpu.dimension_semantics<parallel>], iteration_bounds = array<i64: 1>, scalar_prefetch = 0 : i64, scratch_operands = 0 : i64, tpu.core_type = #tpu.core_type<tc>, window_params = [{transform_indices = @transform_0, window_bounds = array<i64: 1, 128>}, {pipeline_mode = #tpu.pipeline_mode<synchronous>, transform_indices = @transform_1, window_bounds = array<i64: 1, 128>}, {transform_indices = @transform_2, window_bounds = array<i64: 1, 128>}]} {
    %c0 = arith.constant 0 : index
    %c0_0 = arith.constant 0 : index
    %0 = vector.load %arg1[%c0, %c0_0] : memref<1x128xf32, #tpu.memory_space<vmem>>, vector<1x128xf32>
    %cst = arith.constant 1.600000e+01 : f32
    %1 = vector.broadcast %cst : f32 to vector<1x128xf32>
    %2 = arith.mulf %0, %1 : vector<1x128xf32>
    %3 = math.roundeven %2 : vector<1x128xf32>
    %4 = arith.fptosi %3 : vector<1x128xf32> to vector<1x128xi32>
    %c0_i32 = arith.constant 0 : i32
    %c16_i32 = arith.constant 16 : i32
    %5 = vector.broadcast %c0_i32 : i32 to vector<1x128xi32>
    %6 = arith.maxsi %5, %4 : vector<1x128xi32>
    %7 = vector.broadcast %c16_i32 : i32 to vector<1x128xi32>
    %8 = arith.minsi %7, %6 : vector<1x128xi32>
    %9 = tpu.iota {dimensions = array<i32: 0>} : vector<128x128xi32>
    %10 = vector.broadcast %8 : vector<1x128xi32> to vector<128x128xi32>
    %11 = arith.cmpi eq, %9, %10 : vector<128x128xi32>
    %12 = arith.extui %11 : vector<128x128xi1> to vector<128x128xi32>
    %13 = arith.sitofp %12 : vector<128x128xi32> to vector<128x128xf32>
    %c0_1 = arith.constant 0 : index
    %c0_2 = arith.constant 0 : index
    %14 = vector.load %arg2[%c0_1, %c0_2] : memref<1x128xf32, #tpu.memory_space<vmem>>, vector<1x128xf32>
    %cst_3 = arith.constant dense<0.000000e+00> : vector<1x128xf32>
    %15 = tpu.matmul %14, %13, %cst_3 {dimension_numbers = #tpu.dot_dimension_numbers<[1], [0], [0], [1], [0, 0, 1, 1], [], []>} : vector<1x128xf32>, vector<128x128xf32>, vector<1x128xf32> -> vector<1x128xf32>
    %c0_4 = arith.constant 0 : index
    %c0_5 = arith.constant 0 : index
    %16 = vector.load %arg3[%c0_4, %c0_5] : memref<1x128xf32, #tpu.memory_space<vmem>>, vector<1x128xf32>
    tpu.vector_store %arg3[%c0_4, %c0_5], %15 {strides = array<i32>} : memref<1x128xf32, #tpu.memory_space<vmem>>, vector<1x128xf32>,
    return
  }
  func.func @transform_0(%arg0: i32) -> (i32, i32) {
    %c0_i32 = arith.constant 0 : i32
    %c0_i32_0 = arith.constant 0 : i32
    return %c0_i32, %arg0 : i32, i32
  }
  func.func @transform_1(%arg0: i32) -> (i32, i32) {
    %c0_i32 = arith.constant 0 : i32
    %c0_i32_0 = arith.constant 0 : i32
    %c0_i32_1 = arith.constant 0 : i32
    return %c0_i32, %c0_i32_0 : i32, i32
  }
  func.func @transform_2(%arg0: i32) -> (i32, i32) {
    %c0_i32 = arith.constant 0 : i32
    %c0_i32_0 = arith.constant 0 : i32
    return %c0_i32, %arg0 : i32, i32
  }
}

</mosaic_0001>

<bundles_post_ra>
// kernel: tpu_custom_call.1
= control target key start
LH: loop header
LB: loop body
LE: loop exit
PB: predicated region body
PF: predicated region fallthrough
CT: control target
= control target key end

     0   :  { %7 = vsyncpa [#allocation3], 0  ;;  %s406_s0 = inlined_call_operand.hbm [shape: f32[1,128], index: 0, kind: input, shape index: {}]   ;;  %s407_s1 = inlined_call_operand.vmem [shape: f32[1,128], index: 1, kind: input, shape index: {}]   ;;  %s408_s2 = inlined_call_operand.hbm [shape: f32[1,128], index: 2, kind: output, shape index: {}]  }
   0x1   :  { %8 = vsyncpa [#allocation4], 0  ;;  %s323_s9 = smov [#allocation2]  }
   0x2   :  { %s15_s10 = sshll.u32 %s323_s9, 4  ;;  %s16_s10 = int_to_ptr.vmem [resolvable:$true] %s15_s10 }
   0x3   :  { %s287_s11 = scalar_lea.vmem %s16_s10, 16  ;;  %s291_s12 = scalar_lea.vmem %s16_s10, 32 }
   0x4   :  { %p288_p0 = scmp.ne.s32.totalorder %s16_s10, %s287_s11  ;;  %p292_p1 = scmp.lt.s32.totalorder %s16_s10, %s16_s10 }
   0x5   :  { %p293_p2 = scmp.lt.s32.totalorder %s291_s12, %s287_s11 }
   0x7   :  { %p294_p3 = por %p293_p2, %p292_p1 }
   0x9   :  { %p295_p4 = pnand %p294_p3, %p288_p0 }
   0xb   :  { %298 = shalt.err (!%p295_p4)
}
   0xc   :  { %18 = dma.hbm_to_vmem [thread:$0]  %s406_s0, 16, %s16_s10, [#allocation3]  }
   0xd   :  { %319 = dma.done.wait [#allocation3], 16  }
   0xe   :  { %320 = vsyncadd [#allocation3], 4294967280  ;;  %v324_v0 = vmov 0.0   ;;  %vm325_vm0 = vmmov 0   ;;  %v31_v1 = vlaneseq  ;;  %v24_v2 = vld [vmem:[#allocation2] sm:$0x1] }
   0xf   :  { %236 = vmatprep.subr.mxu0 %v324_v0  ;;  %268 = vmatprep.mubr.msk.f32.mxu0 %vm325_vm0, %v324_v0  ;;  %v25_v3 = vmul.f32 16.0, %v24_v2  ;;  %v326_v14 = vmov 1.0   ;;  %v100_v26 = vld [vmem:[%s407_s1] sm:$0x1]  ;;  %s327_s16 = smov [#allocation5]  }
  0x10   :  { %v348_v4 = vshrl.u32 %v31_v1, 7  ;;  %s178_s17 = sshll.u32 %s327_s16, 4  ;;  %s179_s17 = int_to_ptr.vmem [resolvable:$true] %s178_s17 }
  0x11   :  { %v273_v5 = vcvt.f32.s32 %v25_v3  ;;  %s299_s18 = scalar_lea.vmem %s179_s17, 16  ;;  %s303_s19 = scalar_lea.vmem %s179_s17, 32 }
  0x12   :  { %v50_v6 = vsub.s32 0, %v348_v4  ;;  %v47_v8 = vadd.s32 120, %v348_v4  ;;  %v46_v9 = vadd.s32 112, %v348_v4  ;;  %v45_v12 = vadd.s32 104, %v348_v4  ;;  %p300_p5 = scmp.ne.s32.totalorder %s179_s17, %s299_s18  ;;  %p304_p6 = scmp.lt.s32.totalorder %s179_s17, %s179_s17 }
  0x13   :  { %vm27_vm1 = vcmp.gt.s32.totalorder %v273_v5, 0  ;;  %v44_v13 = vadd.s32 96, %v348_v4  ;;  %v43_v15 = vadd.s32 88, %v348_v4  ;;  %v42_v16 = vadd.s32 80, %v348_v4  ;;  %p305_p7 = scmp.lt.s32.totalorder %s303_s19, %s299_s18 }
  0x14   :  { %v28_v7 = vsel %vm27_vm1, %v273_v5, 0  ;;  %v41_v17 = vadd.s32 72, %v348_v4  ;;  %v40_v18 = vadd.s32 64, %v348_v4  ;;  %v39_v19 = vadd.s32 56, %v348_v4 }
  0x15   :  { %vm29_vm2 = vcmp.lt.s32.totalorder %v28_v7, 16  ;;  %v38_v20 = vadd.s32 48, %v348_v4  ;;  %v37_v21 = vadd.s32 40, %v348_v4  ;;  %v36_v22 = vadd.s32 32, %v348_v4  ;;  %p306_p8 = por %p305_p7, %p304_p6 }
  0x16   :  { %v30_v10 = vsel %vm29_vm2, %v28_v7, 16  ;;  %v35_v23 = vadd.s32 24, %v348_v4  ;;  %v34_v24 = vadd.s32 16, %v348_v4  ;;  %v33_v25 = vadd.s32 8, %v348_v4 }
  0x17   :  { %v353_v11 = vrot.slane %v30_v10, %v50_v6  ;;  %p307_p9 = pnand %p306_p8, %p300_p5 }
  0x19   :  { %vm67_vm3 = vcmp.eq.s32.totalorder %v47_v8, %v353_v11  ;;  %vm66_vm4 = vcmp.eq.s32.totalorder %v46_v9, %v353_v11  ;;  %vm65_vm5 = vcmp.eq.s32.totalorder %v45_v12, %v353_v11  ;;  %vm64_vm6 = vcmp.eq.s32.totalorder %v44_v13, %v353_v11 }
  0x1a   :  { %237 = vmatpush3.msk.msra.mxu0 %vm67_vm3, %v326_v14  ;;  %vm63_vm7 = vcmp.eq.s32.totalorder %v43_v15, %v353_v11  ;;  %vm62_vm8 = vcmp.eq.s32.totalorder %v42_v16, %v353_v11  ;;  %vm61_vm9 = vcmp.eq.s32.totalorder %v41_v17, %v353_v11  ;;  %vm60_vm10 = vcmp.eq.s32.totalorder %v40_v18, %v353_v11 }
  0x1b   :  { %238 = vmatprep.subr.mxu0 %v324_v0  ;;  %vm59_vm11 = vcmp.eq.s32.totalorder %v39_v19, %v353_v11  ;;  %vm58_vm12 = vcmp.eq.s32.totalorder %v38_v20, %v353_v11  ;;  %vm57_vm13 = vcmp.eq.s32.totalorder %v37_v21, %v353_v11  ;;  %vm56_vm14 = vcmp.eq.s32.totalorder %v36_v22, %v353_v11 }
  0x1c   :  { %239 = vmatpush3.msk.msra.mxu0 %vm66_vm4, %v326_v14  ;;  %vm55_vm15 = vcmp.eq.s32.totalorder %v35_v23, %v353_v11  ;;  %vm54_vm0 = vcmp.eq.s32.totalorder %v34_v24, %v353_v11  ;;  %vm53_vm1 = vcmp.eq.s32.totalorder %v33_v25, %v353_v11  ;;  %vm52_vm2 = vcmp.eq.s32.totalorder %v348_v4, %v353_v11 }
  0x1d   :  { %240 = vmatprep.subr.mxu0 %v324_v0 }
  0x1e   :  { %241 = vmatpush3.msk.msra.mxu0 %vm65_vm5, %v326_v14 }
  0x1f   :  { %242 = vmatprep.subr.mxu0 %v324_v0 }
  0x20   :  { %243 = vmatpush3.msk.msra.mxu0 %vm64_vm6, %v326_v14 }
  0x21   :  { %244 = vmatprep.subr.mxu0 %v324_v0 }
  0x22   :  { %245 = vmatpush3.msk.msra.mxu0 %vm63_vm7, %v326_v14 }
  0x23   :  { %246 = vmatprep.subr.mxu0 %v324_v0 }
  0x24   :  { %247 = vmatpush3.msk.msra.mxu0 %vm62_vm8, %v326_v14 }
  0x25   :  { %248 = vmatprep.subr.mxu0 %v324_v0 }
  0x26   :  { %249 = vmatpush3.msk.msra.mxu0 %vm61_vm9, %v326_v14 }
  0x27   :  { %250 = vmatprep.subr.mxu0 %v324_v0 }
  0x28   :  { %251 = vmatpush3.msk.msra.mxu0 %vm60_vm10, %v326_v14 }
  0x29   :  { %252 = vmatprep.subr.mxu0 %v324_v0 }
  0x2a   :  { %253 = vmatpush3.msk.msra.mxu0 %vm59_vm11, %v326_v14 }
  0x2b   :  { %254 = vmatprep.subr.mxu0 %v324_v0 }
  0x2c   :  { %255 = vmatpush3.msk.msra.mxu0 %vm58_vm12, %v326_v14 }
  0x2d   :  { %256 = vmatprep.subr.mxu0 %v324_v0 }
  0x2e   :  { %257 = vmatpush3.msk.msra.mxu0 %vm57_vm13, %v326_v14 }
  0x2f   :  { %258 = vmatprep.subr.mxu0 %v324_v0 }
  0x30   :  { %259 = vmatpush3.msk.msra.mxu0 %vm56_vm14, %v326_v14 }
  0x31   :  { %260 = vmatprep.subr.mxu0 %v324_v0 }
  0x32   :  { %261 = vmatpush3.msk.msra.mxu0 %vm55_vm15, %v326_v14 }
  0x33   :  { %262 = vmatprep.subr.mxu0 %v324_v0 }
  0x34   :  { %263 = vmatpush3.msk.msra.mxu0 %vm54_vm0, %v326_v14 }
  0x35   :  { %264 = vmatprep.subr.mxu0 %v324_v0 }
  0x36   :  { %265 = vmatpush3.msk.msra.mxu0 %vm53_vm1, %v326_v14 }
  0x37   :  { %266 = vmatprep.subr.mxu0 %v324_v0 }
  0x38   :  { %267 = vmatpush3.msk.msra.mxu0 %vm52_vm2, %v326_v14 }
  0x39   :  { %269 = vmatmul.mubr.f32.vlgmr.msra.gmra.mxu0 %v100_v26 }
  0xf9   :  { %v167_v27 = vpop.f32.mrf.mxu0 }
  0xfa   :  { %171 = vst [vmem:[#allocation5] sm:$0x1] %v167_v27 }
  0xfb   :  { %v270_v28 = vpop.f32.mrf.mxu0 }
  0xfc   :  { %310 = shalt.err (!%p307_p9)
}
  0xfd   :  { %181 = dma.vmem_to_hbm [thread:$0]  %s179_s17, 16, %s408_s2, [#allocation4]  }
  0xfe   :  { %321 = dma.done.wait [#allocation4], 16  }
  0xff   :  { %322 = vsyncadd [#allocation4], 4294967280 }
 0x100   :  { %185 = vsyncpa [#allocation3], 1 }
 0x101   :  { %186 = vsyncpa [#allocation4], 1 }

</bundles_post_ra>
